<compile_context>
chip_gen: v7x
topology: tpu7x:2x2x1
jax: 0.10.0
libtpu: 0.0.40
codegen_flags: <defaults>
</compile_context>

<pallas_src>
import jax
import jax.numpy as jnp
from jax.experimental import pallas as pl
from jax.experimental.pallas import tpu as pltpu

# Logical and lane-padded sizes.
IN_F, H1, H2, OUT_F = 784, 256, 64, 10
LANE = 128


def _round_up(x, m):
    return ((x + m - 1) // m) * m


H1_P = _round_up(H1, LANE)      # 256 (already aligned)
H2_P = _round_up(H2, LANE)      # 128
OUT_P = _round_up(OUT_F, LANE)  # 128


def mlp_kernel(x_ref, w1_ref, b1_ref, w2_ref, b2_ref, w3_ref, b3_ref, o_ref):
    # x tile: (TB, 784) f32 read straight from HBM; cast to bf16 only for the MXU.
    x = x_ref[...].astype(jnp.bfloat16)
    h1 = jnp.dot(x, w1_ref[...], preferred_element_type=jnp.float32)
    h1 = jnp.maximum(h1 + b1_ref[...], 0.0)                       # (TB, 256) f32

    h2 = jnp.dot(h1.astype(jnp.bfloat16), w2_ref[...],
                 preferred_element_type=jnp.float32)
    h2 = jnp.maximum(h2 + b2_ref[...], 0.0)                       # (TB, 128) f32 (cols 64: = 0)

    h3 = jnp.dot(h2.astype(jnp.bfloat16), w3_ref[...],
                 preferred_element_type=jnp.float32)
    h3 = jnp.maximum(h3 + b3_ref[...], 0.0)                       # (TB, 128) f32 (cols 10: = 0)

    o_ref[...] = h3.astype(o_ref.dtype)                           # bf16 writeback


def prepare_params(params):
    """One-time pad/cast of the weights (call once at init, reuse across forward calls)."""
    w1, b1, w2, b2, w3, b3 = params
    w1p = w1.astype(jnp.bfloat16)                                           # (784, 256)
    b1p = b1.astype(jnp.float32)                                            # (1, 256)
    w2p = jnp.pad(w2.astype(jnp.bfloat16), ((0, 0), (0, H2_P - H2)))        # (256, 128)
    b2p = jnp.pad(b2.astype(jnp.float32), ((0, 0), (0, H2_P - H2)))         # (1, 128)
    w3p = jnp.pad(w3.astype(jnp.bfloat16),
                  ((0, H2_P - H2), (0, OUT_P - OUT_F)))                     # (128, 128)
    b3p = jnp.pad(b3.astype(jnp.float32), ((0, 0), (0, OUT_P - OUT_F)))     # (1, 128)
    return (w1p, b1p, w2p, b2p, w3p, b3p)


def mlp_forward(x, prepared_params, *, block_rows=1024):
    """Equivalent of the PyTorch forward: flatten to (-1, 784), 3x (Linear + ReLU)."""
    x2d = x.reshape(-1, IN_F).astype(jnp.float32)
    B = x2d.shape[0]

    # Batch tile: multiple of 16 (bf16 output sublane tiling), capped so the grid has
    # >=2 steps when the batch allows it (lets v7x shard the batch across both TCs).
    TB = max(16, _round_up(pl.cdiv(B, 2), 16))
    TB = min(_round_up(block_rows, 16), TB)
    Bp = _round_up(B, TB)
    grid = (Bp // TB,)

    # Only pad batch rows (cheap, contiguous). 784 -> 896 lane padding happens inside
    # VMEM for free because the x block covers the full last dim.
    xp = x2d if Bp == B else jnp.pad(x2d, ((0, Bp - B), (0, 0)))

    w1p, b1p, w2p, b2p, w3p, b3p = prepared_params

    def resident(shape):
        # Constant index_map -> DMA'd once, stays VMEM-resident across the batch grid.
        return pl.BlockSpec(shape, lambda i: (0, 0))

    out = pl.pallas_call(
        mlp_kernel,
        out_shape=jax.ShapeDtypeStruct((Bp, OUT_P), jnp.bfloat16),
        grid=grid,
        in_specs=[
            pl.BlockSpec((TB, IN_F), lambda i: (i, 0)),
            resident((IN_F, H1_P)), resident((1, H1_P)),
            resident((H1_P, H2_P)), resident((1, H2_P)),
            resident((H2_P, OUT_P)), resident((1, OUT_P)),
        ],
        out_specs=pl.BlockSpec((TB, OUT_P), lambda i: (i, 0)),
        compiler_params=pltpu.CompilerParams(
            dimension_semantics=("parallel",),
            vmem_limit_bytes=32 * 1024 * 1024,
        ),
    )(xp, w1p, b1p, w2p, b2p, w3p, b3p)

    # Slice away batch padding and the lane-padding of the 10-wide output; upcast last.
    return out[:B, :OUT_F].astype(jnp.float32)


def init_params(key):
    """Deterministic init mirroring nn.Linear shapes.
    PyTorch stores weight as (out, in); we store the transpose (in, out)."""
    keys = jax.random.split(key, 6)

    def linear(kw, kb, fan_in, fan_out):
        bound = 1.0 / jnp.sqrt(fan_in)
        w = jax.random.uniform(kw, (fan_in, fan_out), jnp.float32, -bound, bound)
        b = jax.random.uniform(kb, (1, fan_out), jnp.float32, -bound, bound)
        return w, b

    w1, b1 = linear(keys[0], keys[1], IN_F, H1)
    w2, b2 = linear(keys[2], keys[3], H1, H2)
    w3, b3 = linear(keys[4], keys[5], H2, OUT_F)
    return (w1, b1, w2, b2, w3, b3)


def _ref_forward(x2d, params):
    """Reference matching the kernel math: bf16 inputs to each matmul, f32 accumulate."""
    w1, b1, w2, b2, w3, b3 = params

    def layer(a, w, b):
        a16 = a.astype(jnp.bfloat16).astype(jnp.float32)
        w16 = w.astype(jnp.bfloat16).astype(jnp.float32)
        return jnp.maximum(a16 @ w16 + b, 0.0)

    h = layer(x2d, w1, b1)
    h = layer(h, w2, b2)
    return layer(h, w3, b3)


if __name__ == "__main__":
    key = jax.random.PRNGKey(0)
    kx, kp = jax.random.split(key)

    # Small MNIST-like batch: (batch=8, channels=1, 28, 28) -> flattened to (8, 784)
    x = jax.random.normal(kx, (8, 1, 28, 28), dtype=jnp.float32)
    params = init_params(kp)
    prepared = prepare_params(params)   # pad/cast weights ONCE

    fwd = jax.jit(mlp_forward)
    out = jax.block_until_ready(fwd(x, prepared))

    # Reference check in plain JAX (same math as the PyTorch forward, bf16 MXU inputs).
    x2d = x.reshape(-1, IN_F)
    ref = _ref_forward(x2d, params)

    assert out.shape == (8, OUT_F)
    assert jnp.allclose(out, ref, atol=2e-2, rtol=2e-2), (
        float(jnp.max(jnp.abs(out - ref))))

    # Sanity check against a full-f32 reference (loose tolerance for bf16 quantization).
    ref32 = x2d
    for w, b in ((params[0], params[1]), (params[2], params[3]), (params[4], params[5])):
        ref32 = jnp.maximum(ref32 @ w + b, 0.0)
    assert jnp.allclose(out, ref32, atol=5e-2, rtol=5e-2)

    print("KERNEL_OK")
</pallas_src>

<mosaic_0001>
module attributes {stable_mosaic.version = 11 : i64} {
  func.func @mlp_kernel(%arg0: i32, %arg1: memref<16x784xf32, #tpu.memory_space<vmem>>, %arg2: memref<784x256xbf16, #tpu.memory_space<vmem>>, %arg3: memref<1x256xf32, #tpu.memory_space<vmem>>, %arg4: memref<256x128xbf16, #tpu.memory_space<vmem>>, %arg5: memref<1x128xf32, #tpu.memory_space<vmem>>, %arg6: memref<128x128xbf16, #tpu.memory_space<vmem>>, %arg7: memref<1x128xf32, #tpu.memory_space<vmem>>, %arg8: memref<16x128xbf16, #tpu.memory_space<vmem>>) attributes {dimension_semantics = [#tpu.dimension_semantics<parallel>], iteration_bounds = array<i64: 1>, scalar_prefetch = 0 : i64, scratch_operands = 0 : i64, tpu.core_type = #tpu.core_type<tc>, window_params = [{transform_indices = @transform_0, window_bounds = array<i64: 16, 784>}, {pipeline_mode = #tpu.pipeline_mode<synchronous>, transform_indices = @transform_1, window_bounds = array<i64: 784, 256>}, {pipeline_mode = #tpu.pipeline_mode<synchronous>, transform_indices = @transform_2, window_bounds = array<i64: 1, 256>}, {pipeline_mode = #tpu.pipeline_mode<synchronous>, transform_indices = @transform_3, window_bounds = array<i64: 256, 128>}, {pipeline_mode = #tpu.pipeline_mode<synchronous>, transform_indices = @transform_4, window_bounds = array<i64: 1, 128>}, {pipeline_mode = #tpu.pipeline_mode<synchronous>, transform_indices = @transform_5, window_bounds = array<i64: 128, 128>}, {pipeline_mode = #tpu.pipeline_mode<synchronous>, transform_indices = @transform_6, window_bounds = array<i64: 1, 128>}, {transform_indices = @transform_7, window_bounds = array<i64: 16, 128>}]} {
    %c0 = arith.constant 0 : index
    %c0_0 = arith.constant 0 : index
    %0 = vector.load %arg1[%c0, %c0_0] : memref<16x784xf32, #tpu.memory_space<vmem>>, vector<16x784xf32>
    %1 = arith.truncf %0 : vector<16x784xf32> to vector<16x784xbf16>
    %c0_1 = arith.constant 0 : index
    %c0_2 = arith.constant 0 : index
    %2 = vector.load %arg2[%c0_1, %c0_2] : memref<784x256xbf16, #tpu.memory_space<vmem>>, vector<784x256xbf16>
    %cst = arith.constant dense<0.000000e+00> : vector<16x256xf32>
    %3 = tpu.matmul %1, %2, %cst {dimension_numbers = #tpu.dot_dimension_numbers<[1], [0], [0], [1], [0, 0, 1, 1], [], []>} : vector<16x784xbf16>, vector<784x256xbf16>, vector<16x256xf32> -> vector<16x256xf32>
    %c0_3 = arith.constant 0 : index
    %c0_4 = arith.constant 0 : index
    %4 = vector.load %arg3[%c0_3, %c0_4] : memref<1x256xf32, #tpu.memory_space<vmem>>, vector<1x256xf32>
    %5 = vector.broadcast %4 : vector<1x256xf32> to vector<16x256xf32>
    %6 = arith.addf %3, %5 : vector<16x256xf32>
    %cst_5 = arith.constant 0.000000e+00 : f32
    %7 = vector.broadcast %cst_5 : f32 to vector<16x256xf32>
    %8 = arith.maximumf %6, %7 : vector<16x256xf32>
    %9 = arith.truncf %8 : vector<16x256xf32> to vector<16x256xbf16>
    %c0_6 = arith.constant 0 : index
    %c0_7 = arith.constant 0 : index
    %10 = vector.load %arg4[%c0_6, %c0_7] : memref<256x128xbf16, #tpu.memory_space<vmem>>, vector<256x128xbf16>
    %cst_8 = arith.constant dense<0.000000e+00> : vector<16x128xf32>
    %11 = tpu.matmul %9, %10, %cst_8 {dimension_numbers = #tpu.dot_dimension_numbers<[1], [0], [0], [1], [0, 0, 1, 1], [], []>} : vector<16x256xbf16>, vector<256x128xbf16>, vector<16x128xf32> -> vector<16x128xf32>
    %c0_9 = arith.constant 0 : index
    %c0_10 = arith.constant 0 : index
    %12 = vector.load %arg5[%c0_9, %c0_10] : memref<1x128xf32, #tpu.memory_space<vmem>>, vector<1x128xf32>
    %13 = vector.broadcast %12 : vector<1x128xf32> to vector<16x128xf32>
    %14 = arith.addf %11, %13 : vector<16x128xf32>
    %cst_11 = arith.constant 0.000000e+00 : f32
    %15 = vector.broadcast %cst_11 : f32 to vector<16x128xf32>
    %16 = arith.maximumf %14, %15 : vector<16x128xf32>
    %17 = arith.truncf %16 : vector<16x128xf32> to vector<16x128xbf16>
    %c0_12 = arith.constant 0 : index
    %c0_13 = arith.constant 0 : index
    %18 = vector.load %arg6[%c0_12, %c0_13] : memref<128x128xbf16, #tpu.memory_space<vmem>>, vector<128x128xbf16>
    %cst_14 = arith.constant dense<0.000000e+00> : vector<16x128xf32>
    %19 = tpu.matmul %17, %18, %cst_14 {dimension_numbers = #tpu.dot_dimension_numbers<[1], [0], [0], [1], [0, 0, 1, 1], [], []>} : vector<16x128xbf16>, vector<128x128xbf16>, vector<16x128xf32> -> vector<16x128xf32>
    %c0_15 = arith.constant 0 : index
    %c0_16 = arith.constant 0 : index
    %20 = vector.load %arg7[%c0_15, %c0_16] : memref<1x128xf32, #tpu.memory_space<vmem>>, vector<1x128xf32>
    %21 = vector.broadcast %20 : vector<1x128xf32> to vector<16x128xf32>
    %22 = arith.addf %19, %21 : vector<16x128xf32>
    %cst_17 = arith.constant 0.000000e+00 : f32
    %23 = vector.broadcast %cst_17 : f32 to vector<16x128xf32>
    %24 = arith.maximumf %22, %23 : vector<16x128xf32>
    %25 = arith.truncf %24 : vector<16x128xf32> to vector<16x128xbf16>
    %c0_18 = arith.constant 0 : index
    %c0_19 = arith.constant 0 : index
    %26 = vector.load %arg8[%c0_18, %c0_19] : memref<16x128xbf16, #tpu.memory_space<vmem>>, vector<16x128xbf16>
    tpu.vector_store %arg8[%c0_18, %c0_19], %25 {strides = array<i32>} : memref<16x128xbf16, #tpu.memory_space<vmem>>, vector<16x128xbf16>,
    return
  }
  func.func @transform_0(%arg0: i32) -> (i32, i32) {
    %c0_i32 = arith.constant 0 : i32
    %c0_i32_0 = arith.constant 0 : i32
    return %arg0, %c0_i32 : i32, i32
  }
  func.func @transform_1(%arg0: i32) -> (i32, i32) {
    %c0_i32 = arith.constant 0 : i32
    %c0_i32_0 = arith.constant 0 : i32
    %c0_i32_1 = arith.constant 0 : i32
    return %c0_i32, %c0_i32_0 : i32, i32
  }
  func.func @transform_2(%arg0: i32) -> (i32, i32) {
    %c0_i32 = arith.constant 0 : i32
    %c0_i32_0 = arith.constant 0 : i32
    %c0_i32_1 = arith.constant 0 : i32
    return %c0_i32, %c0_i32_0 : i32, i32
  }
  func.func @transform_3(%arg0: i32) -> (i32, i32) {
    %c0_i32 = arith.constant 0 : i32
    %c0_i32_0 = arith.constant 0 : i32
    %c0_i32_1 = arith.constant 0 : i32
    return %c0_i32, %c0_i32_0 : i32, i32
  }
  func.func @transform_4(%arg0: i32) -> (i32, i32) {
    %c0_i32 = arith.constant 0 : i32
    %c0_i32_0 = arith.constant 0 : i32
    %c0_i32_1 = arith.constant 0 : i32
    return %c0_i32, %c0_i32_0 : i32, i32
  }
  func.func @transform_5(%arg0: i32) -> (i32, i32) {
    %c0_i32 = arith.constant 0 : i32
    %c0_i32_0 = arith.constant 0 : i32
    %c0_i32_1 = arith.constant 0 : i32
    return %c0_i32, %c0_i32_0 : i32, i32
  }
  func.func @transform_6(%arg0: i32) -> (i32, i32) {
    %c0_i32 = arith.constant 0 : i32
    %c0_i32_0 = arith.constant 0 : i32
    %c0_i32_1 = arith.constant 0 : i32
    return %c0_i32, %c0_i32_0 : i32, i32
  }
  func.func @transform_7(%arg0: i32) -> (i32, i32) {
    %c0_i32 = arith.constant 0 : i32
    %c0_i32_0 = arith.constant 0 : i32
    return %arg0, %c0_i32 : i32, i32
  }
}

</mosaic_0001>

<bundles_post_ra>
// kernel: mlp_forward.1
= control target key start
LH: loop header
LB: loop body
LE: loop exit
PB: predicated region body
PF: predicated region fallthrough
CT: control target
= control target key end

     0   :  { %12 = vsyncpa [#allocation3], 0  ;;  %s1554_s24 = smov [#allocation2]   ;;  %s2008_s0 = inlined_call_operand.vmem [shape: f32[16,784], index: 0, kind: input, shape index: {}]   ;;  %s2009_s1 = inlined_call_operand.vmem [shape: bf16[784,256], index: 1, kind: input, shape index: {}]   ;;  %s2010_s2 = inlined_call_operand.vmem [shape: f32[1,256], index: 2, kind: input, shape index: {}]   ;;  %s2011_s3 = inlined_call_operand.vmem [shape: bf16[256,128], index: 3, kind: input, shape index: {}]   ;;  %s2012_s4 = inlined_call_operand.vmem [shape: f32[1,128], index: 4, kind: input, shape index: {}]   ;;  %s2013_s5 = inlined_call_operand.hbm [shape: bf16[128,128], index: 5, kind: input, shape index: {}]   ;;  %s2014_s6 = inlined_call_operand.vmem [shape: f32[1,128], index: 6, kind: input, shape index: {}]   ;;  %s2015_s7 = inlined_call_operand.vmem [shape: bf16[16,128], index: 7, kind: output, shape index: {}]  }
   0x1   :  { %s28_s25 = sshll.u32 %s1554_s24, 4  ;;  %s1530_s28 = scalar_lea.hbm %s2013_s5, 1024  ;;  %s29_s25 = int_to_ptr.vmem [resolvable:$true] %s28_s25 }
   0x2   :  { %p1531_p0 = scmp.ne.s32.totalorder %s2013_s5, %s1530_s28  ;;  %p1534_p1 = scmp.lt.u32.totalorder %s1530_s28, %s2013_s5 }
   0x4   :  { %p1536_p2 = pnand %p1534_p1, %p1531_p0 }
   0x6   :  { %1539 = shalt.err (!%p1536_p2)
}
   0x7   :  { %s1540_s10 = scalar_lea.vmem %s29_s25, 1024  ;;  %p1545_p4 = scmp.lt.s32.totalorder %s29_s25, %s29_s25 }
   0x8   :  { %p1541_p3 = scmp.ne.s32.totalorder %s29_s25, %s1540_s10  ;;  %p1546_p5 = scmp.lt.s32.totalorder %s1540_s10, %s1540_s10 }
   0xa   :  { %p1547_p6 = por %p1546_p5, %p1545_p4 }
   0xc   :  { %p1548_p7 = pnand %p1547_p6, %p1541_p3 }
   0xe   :  { %1551 = shalt.err (!%p1548_p7)
}
   0xf   :  { %s1555_s11 = smov 64   ;;  %s1556_s12 = smov 4  }
  0x10   :  { %34 = dma.hbm_to_vmem [thread:$0]  %s2013_s5, 1024, %s29_s25, [#allocation3], %s1555_s11, %s1555_s11, %s1556_s12  }
  0x11   :  { %1552 = dma.done.wait [#allocation3], 1024  }
  0x12   :  { %1553 = vsyncadd [#allocation3], 4294966272  ;;  %v1359_v0 = vld [vmem:[%s2009_s1 + $0x104] ss:$8 sps:$4 sm:$0xff]   ;;  %v1361_v1 = vld [vmem:[%s2009_s1 + $0x100] ss:$8 sps:$4 sm:$0xff]  }
  0x13   :  { %709 = vmatprep.subr.bf16.mxu0 %v1359_v0  ;;  %v1362_v2 = vld [vmem:[%s2009_s1 + $0x114] ss:$8 sps:$4 sm:$0xff]   ;;  %v1364_v3 = vld [vmem:[%s2009_s1 + $0x110] ss:$8 sps:$4 sm:$0xff]   ;;  %v1365_v4 = vld [vmem:[%s2009_s1 + $0x124] ss:$8 sps:$4 sm:$0xff]  }
  0x14   :  { %710 = vmatpush1.bf16.msra.mxu0 %v1361_v1  ;;  %v1367_v5 = vld [vmem:[%s2009_s1 + $0x120] ss:$8 sps:$4 sm:$0xff]   ;;  %v1368_v6 = vld [vmem:[%s2009_s1 + $0x134] ss:$8 sps:$4 sm:$0xff]   ;;  %v1370_v7 = vld [vmem:[%s2009_s1 + $0x130] ss:$8 sps:$4 sm:$0xff]  }
  0x15   :  { %711 = vmatprep.subr.bf16.mxu0 %v1362_v2  ;;  %v1371_v8 = vld [vmem:[%s2009_s1 + $0x144] ss:$8 sps:$4 sm:$0xff]   ;;  %v1373_v9 = vld [vmem:[%s2009_s1 + $0x140] ss:$8 sps:$4 sm:$0xff]   ;;  %v1374_v10 = vld [vmem:[%s2009_s1 + $0x154] ss:$8 sps:$4 sm:$0xff]  }
  0x16   :  { %v1376_v11 = vld [vmem:[%s2009_s1 + $0x150] ss:$8 sps:$4 sm:$0xff]   ;;  %v1377_v12 = vld [vmem:[%s2009_s1 + $0x164] ss:$8 sps:$4 sm:$0xff]   ;;  %v1379_v16 = vld [vmem:[%s2009_s1 + $0x160] ss:$8 sps:$4 sm:$0xff]  }
  0x17   :  { %v44_v13 = vld [vmem:[%s2008_s0 + $0x18] sm:$0xff]  ;;  %v51_v14 = vld [vmem:[%s2008_s0 + $0x50] sm:$0xff]  ;;  %v1413_v18 = vld [vmem:[%s2009_s1 + $0x4] ss:$8 sps:$4 sm:$0xff]   ;;  %vm662_vm0 = vcmask 130048   ;;  %vm1559_vm1 = vmmov 0  }
  0x18   :  { %712 = vmatpush1.bf16.msra.mxu0 %v1364_v3  ;;  %v58_v15 = vpack.c.bf16 %v51_v14, %v44_v13  ;;  %v1380_v17 = vld [vmem:[%s2009_s1 + $0x174] ss:$8 sps:$4 sm:$0xff]   ;;  %v1382_v19 = vld [vmem:[%s2009_s1 + $0x170] ss:$8 sps:$4 sm:$0xff]   ;;  %v1383_v20 = vld [vmem:[%s2009_s1 + $0x184] ss:$8 sps:$4 sm:$0xff]   ;;  %666 = vmatprep.subr.bf16.mxu1 %v1413_v18 }
  0x19   :  { %713 = vmatprep.subr.bf16.mxu0 %v1365_v4  ;;  %v1418_v21 = vld [vmem:[%s2009_s1] ss:$8 sps:$4 sm:$0xff]   ;;  %v1419_v22 = vld [vmem:[%s2009_s1 + $0x14] ss:$8 sps:$4 sm:$0xff]   ;;  %v1424_v24 = vld [vmem:[%s2009_s1 + $0x10] ss:$8 sps:$4 sm:$0xff]  }
  0x1a   :  { %741 = vmatprep.mubr.bf16.mxu0 %v58_v15  ;;  %667 = vmatpush1.bf16.msra.mxu1 %v1418_v21  ;;  %v1385_v23 = vld [vmem:[%s2009_s1 + $0x180] ss:$8 sps:$4 sm:$0xff]   ;;  %v1425_v25 = vld [vmem:[%s2009_s1 + $0x24] ss:$8 sps:$4 sm:$0xff]   ;;  %v1386_v26 = vld [vmem:[%s2009_s1 + $0x194] ss:$8 sps:$4 sm:$0xff]  }
  0x1b   :  { %668 = vmatprep.subr.bf16.mxu1 %v1419_v22  ;;  %v1430_v27 = vld [vmem:[%s2009_s1 + $0x20] ss:$8 sps:$4 sm:$0xff]   ;;  %v1431_v28 = vld [vmem:[%s2009_s1 + $0x34] ss:$8 sps:$4 sm:$0xff]   ;;  %v1388_v29 = vld [vmem:[%s2009_s1 + $0x190] ss:$8 sps:$4 sm:$0xff]  }
  0x1c   :  { %714 = vmatpush1.bf16.msra.mxu0 %v1367_v5  ;;  %v1389_v30 = vld [vmem:[%s2009_s1 + $0x1a4] ss:$8 sps:$4 sm:$0xff]   ;;  %v1436_v31 = vld [vmem:[%s2009_s1 + $0x30] ss:$8 sps:$4 sm:$0xff]   ;;  %v1391_v33 = vld [vmem:[%s2009_s1 + $0x1a0] ss:$8 sps:$4 sm:$0xff]  }
  0x1d   :  { %715 = vmatprep.subr.bf16.mxu0 %v1368_v6  ;;  %v1437_v32 = vld [vmem:[%s2009_s1 + $0x44] ss:$8 sps:$4 sm:$0xff]   ;;  %v1392_v34 = vld [vmem:[%s2009_s1 + $0x1b4] ss:$8 sps:$4 sm:$0xff]   ;;  %v1442_v35 = vld [vmem:[%s2009_s1 + $0x40] ss:$8 sps:$4 sm:$0xff]  }
  0x1e   :  { %669 = vmatpush1.bf16.msra.mxu1 %v1424_v24  ;;  %v1443_v36 = vld [vmem:[%s2009_s1 + $0x54] ss:$8 sps:$4 sm:$0xff]   ;;  %v1394_v37 = vld [vmem:[%s2009_s1 + $0x1b0] ss:$8 sps:$4 sm:$0xff]   ;;  %v1395_v38 = vld [vmem:[%s2009_s1 + $0x1c4] ss:$8 sps:$4 sm:$0xff]  }
  0x1f   :  { %670 = vmatprep.subr.bf16.mxu1 %v1425_v25  ;;  %v1448_v39 = vld [vmem:[%s2009_s1 + $0x50] ss:$8 sps:$4 sm:$0xff]   ;;  %v1449_v40 = vld [vmem:[%s2009_s1 + $0x64] ss:$8 sps:$4 sm:$0xff]   ;;  %v1397_v41 = vld [vmem:[%s2009_s1 + $0x1c0] ss:$8 sps:$4 sm:$0xff]  }
  0x20   :  { %716 = vmatpush1.bf16.msra.mxu0 %v1370_v7  ;;  %v1398_v42 = vld [vmem:[%s2009_s1 + $0x1d4] ss:$8 sps:$4 sm:$0xff]   ;;  %v1454_v43 = vld [vmem:[%s2009_s1 + $0x60] ss:$8 sps:$4 sm:$0xff]   ;;  %v1400_v45 = vld [vmem:[%s2009_s1 + $0x1d0] ss:$8 sps:$4 sm:$0xff]  }
  0x21   :  { %717 = vmatprep.subr.bf16.mxu0 %v1371_v8  ;;  %v1455_v44 = vld [vmem:[%s2009_s1 + $0x74] ss:$8 sps:$4 sm:$0xff]   ;;  %v1401_v46 = vld [vmem:[%s2009_s1 + $0x1e4] ss:$8 sps:$4 sm:$0xff]   ;;  %v1460_v47 = vld [vmem:[%s2009_s1 + $0x70] ss:$8 sps:$4 sm:$0xff]  }
  0x22   :  { %671 = vmatpush1.bf16.msra.mxu1 %v1430_v27  ;;  %v1461_v48 = vld [vmem:[%s2009_s1 + $0x84] ss:$8 sps:$4 sm:$0xff]   ;;  %v1403_v49 = vld [vmem:[%s2009_s1 + $0x1e0] ss:$8 sps:$4 sm:$0xff]   ;;  %v1404_v50 = vld [vmem:[%s2009_s1 + $0x1f4] ss:$8 sps:$4 sm:$0xff]  }
  0x23   :  { %672 = vmatprep.subr.bf16.mxu1 %v1431_v28  ;;  %v1466_v51 = vld [vmem:[%s2009_s1 + $0x80] ss:$8 sps:$4 sm:$0xff]   ;;  %v1467_v52 = vld [vmem:[%s2009_s1 + $0x94] ss:$8 sps:$4 sm:$0xff]   ;;  %v1406_v53 = vld [vmem:[%s2009_s1 + $0x1f0] ss:$8 sps:$4 sm:$0xff]  }
  0x24   :  { %718 = vmatpush1.bf16.msra.mxu0 %v1373_v9  ;;  %v43_v54 = vld [vmem:[%s2008_s0 + $0x10] sm:$0xff]  ;;  %v50_v55 = vld [vmem:[%s2008_s0 + $0x48] sm:$0xff]  ;;  %v53_v62 = vld [vmem:[%s2008_s0 + $0x60] sm:$0xff] }
  0x25   :  { %719 = vmatprep.subr.bf16.mxu0 %v1374_v10  ;;  %v1409_v56 = vld [vmem:[%s2009_s1 + $0x204] ss:$8 sps:$4 sm:$0xff]   ;;  %v1472_v57 = vld [vmem:[%s2009_s1 + $0x90] ss:$8 sps:$4 sm:$0xff]   ;;  %v1407_v58 = vld [vmem:[%s2009_s1 + $0x200] ss:$8 sps:$4 sm:$0xff]   ;;  %v57_v59 = vpack.c.bf16 %v50_v55, %v43_v54 }
  0x26   :  { %673 = vmatpush1.bf16.msra.mxu1 %v1436_v31  ;;  %v1473_v60 = vld [vmem:[%s2009_s1 + $0xa4] ss:$8 sps:$4 sm:$0xff]   ;;  %v1412_v63 = vld [vmem:[%s2009_s1 + $0x214] ss:$8 sps:$4 sm:$0xff]   ;;  %v1478_v1 = vld [vmem:[%s2009_s1 + $0xa0] ss:$8 sps:$4 sm:$0xff]  }
  0x27   :  { %674 = vmatprep.subr.bf16.mxu1 %v1437_v32  ;;  %v46_v61 = vld [vmem:[%s2008_s0 + $0x28] sm:$0xff]  ;;  %v1479_v2 = vld [vmem:[%s2009_s1 + $0xb4] ss:$8 sps:$4 sm:$0xff]   ;;  %v1410_v3 = vld [vmem:[%s2009_s1 + $0x210] ss:$8 sps:$4 sm:$0xff]  }
  0x28   :  { %720 = vmatpush1.bf16.msra.mxu0 %v1376_v11  ;;  %v60_v0 = vpack.c.bf16 %v53_v62, %v46_v61  ;;  %v1417_v4 = vld [vmem:[%s2009_s1 + $0x224] ss:$8 sps:$4 sm:$0xff]   ;;  %v1484_v7 = vld [vmem:[%s2009_s1 + $0xb0] ss:$8 sps:$4 sm:$0xff]   ;;  %v1415_v10 = vld [vmem:[%s2009_s1 + $0x220] ss:$8 sps:$4 sm:$0xff]  }
  0x29   :  { %721 = vmatprep.subr.bf16.mxu0 %v1377_v12  ;;  %v42_v5 = vld [vmem:[%s2008_s0 + $0x8] sm:$0xff]  ;;  %v49_v6 = vld [vmem:[%s2008_s0 + $0x40] sm:$0xff]  ;;  %v1423_v11 = vld [vmem:[%s2009_s1 + $0x234] ss:$8 sps:$4 sm:$0xff]   ;;  %v1557_v61 = vmov 0  }
  0x2a   :  { %675 = vmatpush1.bf16.msra.mxu1 %v1442_v35  ;;  %v56_v8 = vpack.c.bf16 %v49_v6, %v42_v5  ;;  %v1485_v9 = vld [vmem:[%s2009_s1 + $0xc4] ss:$8 sps:$4 sm:$0xff]   ;;  %v1490_v12 = vld [vmem:[%s2009_s1 + $0xc0] ss:$8 sps:$4 sm:$0xff]   ;;  %v1491_v13 = vld [vmem:[%s2009_s1 + $0xd4] ss:$8 sps:$4 sm:$0xff]  }
  0x2b   :  { %676 = vmatprep.subr.bf16.mxu1 %v1443_v36  ;;  %v1421_v14 = vld [vmem:[%s2009_s1 + $0x230] ss:$8 sps:$4 sm:$0xff]   ;;  %v1429_v15 = vld [vmem:[%s2009_s1 + $0x244] ss:$8 sps:$4 sm:$0xff]   ;;  %v1435_v18 = vld [vmem:[%s2009_s1 + $0x254] ss:$8 sps:$4 sm:$0xff]  }
  0x2c   :  { %722 = vmatpush1.bf16.msra.mxu0 %v1379_v16  ;;  %698 = vmatprep.mubr.bf16.mxu1 %v56_v8  ;;  %v1427_v16 = vld [vmem:[%s2009_s1 + $0x240] ss:$8 sps:$4 sm:$0xff]   ;;  %v1503_v21 = vld [vmem:[%s2009_s1 + $0xf4] ss:$8 sps:$4 sm:$0xff]   ;;  %v1433_v22 = vld [vmem:[%s2009_s1 + $0x250] ss:$8 sps:$4 sm:$0xff]  }
  0x2d   :  { %723 = vmatprep.subr.bf16.mxu0 %v1380_v17  ;;  %v1496_v17 = vld [vmem:[%s2009_s1 + $0xd0] ss:$8 sps:$4 sm:$0xff]   ;;  %v41_v25 = vld [vmem:[%s2008_s0] sm:$0xff]  ;;  %v1508_v32 = vld [vmem:[%s2011_s3 + $0x48] sm:$0xff]   ;;  %v1558_v8 = vmov 0.0  }
  0x2e   :  { %677 = vmatpush1.bf16.msra.mxu1 %v1448_v39  ;;  %v1505_v24 = vld [vmem:[%s2009_s1 + $0xf0] ss:$8 sps:$4 sm:$0xff]   ;;  %v1506_v27 = vld [vmem:[%s2011_s3 + $0x40] sm:$0xff]   ;;  %v1509_v35 = vld [vmem:[%s2011_s3 + $0x8] sm:$0xff]  }
  0x2f   :  { %678 = vmatprep.subr.bf16.mxu1 %v1449_v40  ;;  %v1439_v28 = vld [vmem:[%s2009_s1 + $0x260] ss:$8 sps:$4 sm:$0xff]   ;;  %v1510_v36 = vld [vmem:[%s2011_s3 + $0x50] sm:$0xff]   ;;  %v1512_v40 = vld [vmem:[%s2011_s3 + $0x58] sm:$0xff]  }
  0x30   :  { %724 = vmatpush1.bf16.msra.mxu0 %v1382_v19  ;;  %v1497_v19 = vld [vmem:[%s2009_s1 + $0xe4] ss:$8 sps:$4 sm:$0xff]   ;;  %v1511_v39 = vld [vmem:[%s2011_s3 + $0x10] sm:$0xff]   ;;  %v1520_v6 = vld [vmem:[%s2011_s3 + $0x78] sm:$0xff]  }
  0x31   :  { %725 = vmatprep.subr.bf16.mxu0 %v1383_v20  ;;  %v1502_v20 = vld [vmem:[%s2009_s1 + $0xe0] ss:$8 sps:$4 sm:$0xff]   ;;  %v1495_v54 = vld [vmem:[%s2009_s1 + $0x2f4] ss:$8 sps:$4 sm:$0xff]   ;;  %v1493_v55 = vld [vmem:[%s2009_s1 + $0x2f0] ss:$8 sps:$4 sm:$0xff]  }
  0x32   :  { %679 = vmatpush1.bf16.msra.mxu1 %v1454_v43  ;;  %v1507_v31 = vld [vmem:[%s2011_s3] sm:$0xff]   ;;  %v1513_v43 = vld [vmem:[%s2011_s3 + $0x18] sm:$0xff]   ;;  %v47_v62 = vld [vmem:[%s2008_s0 + $0x30] sm:$0xff] }
  0x33   :  { %680 = vmatprep.subr.bf16.mxu1 %v1455_v44  ;;  %v1514_v44 = vld [vmem:[%s2011_s3 + $0x60] sm:$0xff]   ;;  %v1519_v5 = vld [vmem:[%s2011_s3 + $0x30] sm:$0xff]  }
  0x34   :  { %726 = vmatpush1.bf16.msra.mxu0 %v1385_v23  ;;  %v1441_v23 = vld [vmem:[%s2009_s1 + $0x264] ss:$8 sps:$4 sm:$0xff]  }
  0x35   :  { %727 = vmatprep.subr.bf16.mxu0 %v1386_v26  ;;  %v48_v26 = vld [vmem:[%s2008_s0 + $0x38] sm:$0xff] }
  0x36   :  { %681 = vmatpush1.bf16.msra.mxu1 %v1460_v47  ;;  %v1469_v47 = vld [vmem:[%s2009_s1 + $0x2b0] ss:$8 sps:$4 sm:$0xff]  }
  0x37   :  { %682 = vmatprep.subr.bf16.mxu1 %v1461_v48  ;;  %v1477_v48 = vld [vmem:[%s2009_s1 + $0x2c4] ss:$8 sps:$4 sm:$0xff]  }
  0x38   :  { %728 = vmatpush1.bf16.msra.mxu0 %v1388_v29  ;;  %v1447_v29 = vld [vmem:[%s2009_s1 + $0x274] ss:$8 sps:$4 sm:$0xff]  }
  0x39   :  { %729 = vmatprep.subr.bf16.mxu0 %v1389_v30  ;;  %v55_v30 = vpack.c.bf16 %v48_v26, %v41_v25 }
  0x3a   :  { %683 = vmatpush1.bf16.msra.mxu1 %v1466_v51  ;;  %v1481_v51 = vld [vmem:[%s2009_s1 + $0x2d0] ss:$8 sps:$4 sm:$0xff]  }
  0x3b   :  { %684 = vmatprep.subr.bf16.mxu1 %v1467_v52  ;;  %v1489_v52 = vld [vmem:[%s2009_s1 + $0x2e4] ss:$8 sps:$4 sm:$0xff]  }
  0x3c   :  { %730 = vmatpush1.bf16.msra.mxu0 %v1391_v33  ;;  %v1445_v33 = vld [vmem:[%s2009_s1 + $0x270] ss:$8 sps:$4 sm:$0xff]  }
  0x3d   :  { %731 = vmatprep.subr.bf16.mxu0 %v1392_v34  ;;  %v1453_v34 = vld [vmem:[%s2009_s1 + $0x284] ss:$8 sps:$4 sm:$0xff]  }
  0x3e   :  { %685 = vmatpush1.bf16.msra.mxu1 %v1472_v57  ;;  %v52_v57 = vld [vmem:[%s2008_s0 + $0x58] sm:$0xff] }
  0x3f   :  { %686 = vmatprep.subr.bf16.mxu1 %v1473_v60  ;;  %v1499_v60 = vld [vmem:[%s2009_s1 + $0x300] ss:$8 sps:$4 sm:$0xff]  }
  0x40   :  { %732 = vmatpush1.bf16.msra.mxu0 %v1394_v37  ;;  %v1451_v37 = vld [vmem:[%s2009_s1 + $0x280] ss:$8 sps:$4 sm:$0xff]  }
  0x41   :  { %733 = vmatprep.subr.bf16.mxu0 %v1395_v38  ;;  %v1459_v38 = vld [vmem:[%s2009_s1 + $0x294] ss:$8 sps:$4 sm:$0xff]  }
  0x42   :  { %687 = vmatpush1.bf16.msra.mxu1 %v1478_v1  ;;  %v1515_v1 = vld [vmem:[%s2011_s3 + $0x20] sm:$0xff]  }
  0x43   :  { %688 = vmatprep.subr.bf16.mxu1 %v1479_v2  ;;  %v1516_v2 = vld [vmem:[%s2011_s3 + $0x68] sm:$0xff]  }
  0x44   :  { %734 = vmatpush1.bf16.msra.mxu0 %v1397_v41  ;;  %v1457_v41 = vld [vmem:[%s2009_s1 + $0x290] ss:$8 sps:$4 sm:$0xff]  }
  0x45   :  { %735 = vmatprep.subr.bf16.mxu0 %v1398_v42  ;;  %v1465_v42 = vld [vmem:[%s2009_s1 + $0x2a4] ss:$8 sps:$4 sm:$0xff]  }
  0x46   :  { %689 = vmatpush1.bf16.msra.mxu1 %v1484_v7  ;;  %v1521_v7 = vld [vmem:[%s2011_s3 + $0x38] sm:$0xff]  }
  0x47   :  { %690 = vmatprep.subr.bf16.mxu1 %v1485_v9 }
  0x48   :  { %736 = vmatpush1.bf16.msra.mxu0 %v1400_v45  ;;  %v1463_v45 = vld [vmem:[%s2009_s1 + $0x2a0] ss:$8 sps:$4 sm:$0xff]  }
  0x49   :  { %737 = vmatprep.subr.bf16.mxu0 %v1401_v46  ;;  %v1471_v46 = vld [vmem:[%s2009_s1 + $0x2b4] ss:$8 sps:$4 sm:$0xff]  }
  0x4a   :  { %691 = vmatpush1.bf16.msra.mxu1 %v1490_v12 }
  0x4b   :  { %692 = vmatprep.subr.bf16.mxu1 %v1491_v13  ;;  %v162_v13 = vlaneseq }
  0x4c   :  { %738 = vmatpush1.bf16.msra.mxu0 %v1403_v49  ;;  %v1475_v49 = vld [vmem:[%s2009_s1 + $0x2c0] ss:$8 sps:$4 sm:$0xff]  }
  0x4d   :  { %739 = vmatprep.subr.bf16.mxu0 %v1404_v50  ;;  %v1483_v50 = vld [vmem:[%s2009_s1 + $0x2d4] ss:$8 sps:$4 sm:$0xff]  }
  0x4e   :  { %693 = vmatpush1.bf16.msra.mxu1 %v1496_v17 }
  0x4f   :  { %694 = vmatprep.subr.bf16.mxu1 %v1497_v19 }
  0x50   :  { %740 = vmatpush1.bf16.msra.mxu0 %v1406_v53  ;;  %v1487_v53 = vld [vmem:[%s2009_s1 + $0x2e0] ss:$8 sps:$4 sm:$0xff]  }
  0x51   :  { %752 = vmatprep.subr.bf16.mxu0 %v1409_v56  ;;  %v45_v56 = vld [vmem:[%s2008_s0 + $0x20] sm:$0xff] }
  0x52   :  { %695 = vmatpush1.bf16.msra.mxu1 %v1502_v20 }
  0x53   :  { %742 = vmatmul.mubr.bf16.vlgmr.msra.gmra.mrb[0].mxu0 %v57_v59  ;;  %696 = vmatprep.subr.bf16.mxu1 %v1503_v21  ;;  %v59_v59 = vpack.c.bf16 %v52_v57, %v45_v56 }
  0x54   :  { %753 = vmatpush1.bf16.msra.mxu0 %v1407_v58  ;;  %784 = vmatprep.mubr.bf16.mxu0 %v60_v0  ;;  %v1501_v58 = vld [vmem:[%s2009_s1 + $0x304] ss:$8 sps:$4 sm:$0xff]  }
  0x55   :  { %754 = vmatprep.subr.bf16.mxu0 %v1412_v63  ;;  %v54_v63 = vld [vmem:[%s2008_s0 + $0x68] sm:$0xff] }
  0x56   :  { %697 = vmatpush1.bf16.msra.mxu1 %v1505_v24  ;;  %v61_v0 = vpack.c.bf16 %v54_v63, %v47_v62 }
  0x57   :  { %1286 = vmatprep.subr.bf16.mxu1 %v1506_v27 }
  0x58   :  { %755 = vmatpush1.bf16.msra.mxu0 %v1410_v3  ;;  %v1517_v3 = vld [vmem:[%s2011_s3 + $0x28] sm:$0xff]  }
  0x59   :  { %756 = vmatprep.subr.bf16.mxu0 %v1417_v4  ;;  %699 = vmatmul.mubr.bf16.vlgmr.msra.gmra.mrb[0].mxu1 %v55_v30  ;;  %v1518_v4 = vld [vmem:[%s2011_s3 + $0x70] sm:$0xff]  }
  0x5a   :  { %1287 = vmatpush3.bf16.msra.mxu1 %v1507_v31 }
  0x5b   :  { %1288 = vmatprep.subr.bf16.mxu1 %v1508_v32 }
  0x5c   :  { %757 = vmatpush1.bf16.msra.mxu0 %v1415_v10 }
  0x5d   :  { %758 = vmatprep.subr.bf16.mxu0 %v1423_v11 }
  0x5e   :  { %1289 = vmatpush3.bf16.msra.mxu1 %v1509_v35 }
  0x5f   :  { %1290 = vmatprep.subr.bf16.mxu1 %v1510_v36 }
  0x60   :  { %759 = vmatpush1.bf16.msra.mxu0 %v1421_v14  ;;  %v163_v14 = vshrl.u32 %v162_v13, 7 }
  0x61   :  { %760 = vmatprep.subr.bf16.mxu0 %v1429_v15 }
  0x62   :  { %1291 = vmatpush3.bf16.msra.mxu1 %v1511_v39  ;;  %v164_v15 = vsub.s32 0, %v163_v14  ;;  %v168_v17 = vsub.s32 1, %v163_v14  ;;  %v1523_v39 = vld [vmem:[#allocation2 + $0x8] sm:$0xff]  }
  0x63   :  { %1292 = vmatprep.subr.bf16.mxu1 %v1512_v40  ;;  %v1524_v40 = vld [vmem:[#allocation2 + $0x10] sm:$0xff]  }
  0x64   :  { %761 = vmatpush1.bf16.msra.mxu0 %v1427_v16  ;;  %v160_v16 = vld [vmem:[%s2010_s2] sm:$0x3] }
  0x65   :  { %762 = vmatprep.subr.bf16.mxu0 %v1435_v18  ;;  %v165_v18 = vrot.slane %v160_v16, %v164_v15  ;;  %v169_v19 = vrot.slane %v160_v16, %v168_v17 }
  0x66   :  { %1293 = vmatpush3.bf16.msra.mxu1 %v1513_v43  ;;  %v1527_v43 = vld [vmem:[#allocation2 + $0x28] sm:$0xff]  }
  0x67   :  { %1294 = vmatprep.subr.bf16.mxu1 %v1514_v44  ;;  %v1528_v44 = vld [vmem:[#allocation2 + $0x30] sm:$0xff]  }
  0x68   :  { %763 = vmatpush1.bf16.msra.mxu0 %v1433_v22 }
  0x69   :  { %764 = vmatprep.subr.bf16.mxu0 %v1441_v23 }
  0x6a   :  { %1295 = vmatpush3.bf16.msra.mxu1 %v1515_v1 }
  0x6b   :  { %1296 = vmatprep.subr.bf16.mxu1 %v1516_v2 }
  0x6c   :  { %765 = vmatpush1.bf16.msra.mxu0 %v1439_v28 }
  0x6d   :  { %766 = vmatprep.subr.bf16.mxu0 %v1447_v29 }
  0x6e   :  { %1297 = vmatpush3.bf16.msra.mxu1 %v1517_v3 }
  0x6f   :  { %1298 = vmatprep.subr.bf16.mxu1 %v1518_v4 }
  0x70   :  { %767 = vmatpush1.bf16.msra.mxu0 %v1445_v33 }
  0x71   :  { %768 = vmatprep.subr.bf16.mxu0 %v1453_v34 }
  0x72   :  { %1299 = vmatpush3.bf16.msra.mxu1 %v1519_v5 }
  0x73   :  { %1300 = vmatprep.subr.bf16.mxu1 %v1520_v6 }
  0x74   :  { %769 = vmatpush1.bf16.msra.mxu0 %v1451_v37 }
  0x75   :  { %770 = vmatprep.subr.bf16.mxu0 %v1459_v38  ;;  %v1522_v38 = vld [vmem:[#allocation2] sm:$0xff]  }
  0x76   :  { %1301 = vmatpush3.bf16.msra.mxu1 %v1521_v7 }
  0x77   :  { %1317 = vmatprep.subr.bf16.mxu1 %v1558_v8 }
  0x78   :  { %771 = vmatpush1.bf16.msra.mxu0 %v1457_v41  ;;  %v1525_v41 = vld [vmem:[#allocation2 + $0x18] sm:$0xff]  }
  0x79   :  { %772 = vmatprep.subr.bf16.mxu0 %v1465_v42  ;;  %v1526_v42 = vld [vmem:[#allocation2 + $0x20] sm:$0xff]  }
  0x7c   :  { %773 = vmatpush1.bf16.msra.mxu0 %v1463_v45  ;;  %v1529_v45 = vld [vmem:[#allocation2 + $0x38] sm:$0xff]  }
  0x7d   :  { %774 = vmatprep.subr.bf16.mxu0 %v1471_v46 }
  0x80   :  { %775 = vmatpush1.bf16.msra.mxu0 %v1469_v47  ;;  %v1251_v47 = vld [vmem:[%s2012_s4] ss:$0 sm:$0xff] }
  0x81   :  { %776 = vmatprep.subr.bf16.mxu0 %v1477_v48 }
  0x84   :  { %777 = vmatpush1.bf16.msra.mxu0 %v1475_v49 }
  0x85   :  { %778 = vmatprep.subr.bf16.mxu0 %v1483_v50 }
  0x88   :  { %779 = vmatpush1.bf16.msra.mxu0 %v1481_v51 }
  0x89   :  { %780 = vmatprep.subr.bf16.mxu0 %v1489_v52 }
  0x8c   :  { %781 = vmatpush1.bf16.msra.mxu0 %v1487_v53 }
  0x8d   :  { %782 = vmatprep.subr.bf16.mxu0 %v1495_v54 }
  0x90   :  { %783 = vmatpush1.bf16.msra.mxu0 %v1493_v55 }
  0x91   :  { %795 = vmatprep.subr.bf16.mxu0 %v1501_v58  ;;  %v1268_v58 = vld [vmem:[%s2014_s6] ss:$0 sm:$0xff] }
  0x93   :  { %785 = vmatmul.mubr.bf16.vlgmr.msra.gmra.mrb[0].mxu0 %v59_v59 }
  0x94   :  { %796 = vmatpush1.bf16.msra.mxu0 %v1499_v60  ;;  %827 = vmatprep.mubr.bf16.mxu0 %v1557_v61 }
  0x9f   :  { %1250 = vmatmul.mubr.msk.bf16.vlgmr.msra.gmra.mrb[0].mxu0 %vm662_vm0, %v61_v0 }
 0x12c   :  { %v700_v9 = vpop.f32.mrb[0].mxu1 }
 0x12d   :  { %v702_v10 = vpop.f32.mrb[1].mxu1  ;;  %v701_v20 = vadd.f32 %v700_v9, %v165_v18 }
 0x12e   :  { %v704_v11 = vpop.f32.mrb[2].mxu1  ;;  %v703_v21 = vadd.f32 %v702_v10, %v169_v19 }
 0x12f   :  { %v706_v12 = vpop.f32.mrb[3].mxu1  ;;  %v705_v23 = vadd.f32 %v704_v11, %v165_v18 }
 0x130   :  { %v707_v26 = vadd.f32 %v706_v12, %v169_v19 }
 0x172   :  { %v829_v22 = vpop.f32.mrb[0].mxu0 }
 0x173   :  { %v1338_v24 = vadd.f32 %v829_v22, %v701_v20  ;;  %v831_v25 = vpop.f32.mrb[1].mxu0 }
 0x174   :  { %v1340_v27 = vadd.f32 %v831_v25, %v703_v21  ;;  %v833_v28 = vpop.f32.mrb[2].mxu0 }
 0x175   :  { %v1342_v29 = vadd.f32 %v833_v28, %v705_v23  ;;  %v835_v30 = vpop.f32.mrb[3].mxu0  ;;  %v838_v32 = vmax.f32 %v1338_v24, 0.0 }
 0x176   :  { %v1344_v31 = vadd.f32 %v835_v30, %v707_v26  ;;  %v839_v34 = vmax.f32 %v1340_v27, 0.0 }
 0x177   :  { %v840_v33 = vmax.f32 %v1342_v29, 0.0 }
 0x178   :  { %v841_v35 = vmax.f32 %v1344_v31, 0.0 }
 0x179   :  { %v842_v36 = vpack.c.bf16 %v840_v33, %v838_v32 }
 0x17a   :  { %v843_v37 = vpack.c.bf16 %v841_v35, %v839_v34 }
 0x17c   :  { %1011 = vmatprep.mubr.bf16.mxu1 %v843_v37 }
 0x17d   :  { %1012 = vmatmul.mubr.bf16.vlgmr.msra.gmra.mrb[4].mxu1 %v842_v36 }
 0x17e   :  { %1318 = vmatpush3.bf16.msra.mxu1 %v1522_v38  ;;  %1333 = vmatprep.mubr.msk.bf16.mxu1 %vm1559_vm1, %v1558_v8 }
 0x17f   :  { %1319 = vmatprep.subr.bf16.mxu1 %v1558_v8 }
 0x182   :  { %1320 = vmatpush3.bf16.msra.mxu1 %v1523_v39 }
 0x183   :  { %1321 = vmatprep.subr.bf16.mxu1 %v1558_v8 }
 0x186   :  { %1322 = vmatpush3.bf16.msra.mxu1 %v1524_v40 }
 0x187   :  { %1323 = vmatprep.subr.bf16.mxu1 %v1558_v8 }
 0x18a   :  { %1324 = vmatpush3.bf16.msra.mxu1 %v1525_v41 }
 0x18b   :  { %1325 = vmatprep.subr.bf16.mxu1 %v1558_v8 }
 0x18e   :  { %1326 = vmatpush3.bf16.msra.mxu1 %v1526_v42 }
 0x18f   :  { %1327 = vmatprep.subr.bf16.mxu1 %v1558_v8 }
 0x192   :  { %1328 = vmatpush3.bf16.msra.mxu1 %v1527_v43 }
 0x193   :  { %1329 = vmatprep.subr.bf16.mxu1 %v1558_v8 }
 0x196   :  { %1330 = vmatpush3.bf16.msra.mxu1 %v1528_v44 }
 0x197   :  { %1331 = vmatprep.subr.bf16.mxu1 %v1558_v8 }
 0x19a   :  { %1332 = vmatpush3.bf16.msra.mxu1 %v1529_v45 }
 0x250   :  { %v1302_v46 = vpop.f32.mrb[4].mxu1 }
 0x251   :  { %v1303_v48 = vpop.f32.mrb[5].mxu1 }
 0x252   :  { %v1304_v49 = vadd.f32 %v1303_v48, %v1302_v46  ;;  %v1305_v50 = vpop.f32.mrb[6].mxu1 }
 0x253   :  { %v1306_v51 = vpop.f32.mrb[7].mxu1 }
 0x254   :  { %v1014_v52 = vadd.f32 %v1304_v49, %v1251_v47  ;;  %v1307_v53 = vadd.f32 %v1306_v51, %v1305_v50 }
 0x256   :  { %v1017_v54 = vadd.f32 %v1307_v53, %v1251_v47  ;;  %v1020_v55 = vmax.f32 %v1014_v52, 0.0 }
 0x258   :  { %v1021_v56 = vmax.f32 %v1017_v54, 0.0 }
 0x25a   :  { %v1022_v57 = vpack.c.bf16 %v1021_v56, %v1020_v55 }
 0x25c   :  { %1334 = vmatmul.mubr.bf16.vlgmr.msra.gmra.mrb[8].mxu1 %v1022_v57 }
 0x32f   :  { %v1128_v59 = vpop.f32.mrb[8].mxu1 }
 0x330   :  { %v1129_v60 = vadd.f32 %v1268_v58, %v1128_v59  ;;  %v1335_v61 = vpop.f32.mrb[9].mxu1 }
 0x331   :  { %v1131_v62 = vpop.f32.mrb[10].mxu1 }
 0x332   :  { %v1132_v63 = vadd.f32 %v1268_v58, %v1131_v62  ;;  %v1336_v0 = vpop.f32.mrb[11].mxu1  ;;  %v1135_v1 = vmax.f32 %v1129_v60, 0.0 }
 0x334   :  { %v1136_v2 = vmax.f32 %v1132_v63, 0.0 }
 0x336   :  { %v1284_v3 = vpack.c.bf16 %v1136_v2, %v1135_v1 }
 0x338   :  { %1285 = vst [vmem:[%s2015_s7] sm:$0xff] %v1284_v3  }
 0x339   :  { %1151 = vsyncpa [#allocation3], 1 }

</bundles_post_ra>
